<compile_context>
chip_gen: v6e
topology: v6e:2x2x1
jax: 0.10.0
libtpu: 0.0.40
codegen_flags: <defaults>
</compile_context>

<pallas_src>
import jax
import jax.numpy as jnp
from jax.experimental import pallas as pl
from jax.experimental.pallas import tpu as pltpu


_MAX_COLS = 4096                       # lane-dense cap (32 vregs wide)
_FALLBACK_COLS = 512                   # pad-path width (4 vregs; small pad waste)
_TARGET_BLOCK_BYTES = 8 * 1024 * 1024  # ~8 MiB/block -> 32 MiB with 2x(in+out) buffers
_MIN_BLOCK_BYTES = 256 * 1024          # never split blocks below this
_MIN_GRID_STEPS = 8                    # even, >= 4: both v7x TCs get >= 4 blocks each
_SMALL_BYPASS_ELEMS = 64 * 1024        # below this, fused XLA tanh wins


def _round_up(a: int, b: int) -> int:
    return ((a + b - 1) // b) * b


def _vmem_limit_bytes() -> int:
    """Generation-aware VMEM limit: v5e/v6e have 128 MiB physical, v7x only 64 MiB."""
    try:
        phys = getattr(pltpu.get_tpu_info(), "vmem_capacity_bytes", None)
    except Exception:
        phys = None
    if phys is not None and phys >= 100 * 1024 * 1024:
        return 64 * 1024 * 1024   # v5e / v6e: ample headroom
    return 40 * 1024 * 1024       # v7x or unknown: 32 MiB of buffers still fits


def _tanh_kernel(x_ref, o_ref):
    # jnp.tanh maps to the EUP transcendental slot -> hides under the HBM DMA.
    o_ref[...] = jnp.tanh(x_ref[...])


def _choose_cols(n: int, sublane: int):
    """Largest multiple of 128 that divides n (<= _MAX_COLS, rows >= sublane)."""
    if n % 128 != 0:
        return None
    m = n // 128
    max_g = min(_MAX_COLS // 128, (n // sublane) // 128)
    for g in range(max_g, 0, -1):
        if m % g == 0:
            return 128 * g
    return None


def _choose_tiling(rows: int, cols: int, itemsize: int, sublane: int):
    """Pick (tile_rows, grid): even grid >= _MIN_GRID_STEPS when feasible,
    blocks between _MIN_BLOCK_BYTES and _TARGET_BLOCK_BYTES."""
    bytes_per_row = cols * itemsize
    max_tile_rows = max(sublane,
                        (_TARGET_BLOCK_BYTES // bytes_per_row) // sublane * sublane)
    min_tile_rows = max(sublane,
                        (_MIN_BLOCK_BYTES // bytes_per_row) // sublane * sublane)
    steps_by_size = pl.cdiv(rows, max_tile_rows)
    max_steps = max(1, rows // min_tile_rows)
    num_steps = min(max(steps_by_size, _MIN_GRID_STEPS), max_steps)
    if num_steps > 1 and num_steps % 2 == 1:
        num_steps = num_steps + 1 if num_steps + 1 <= max_steps else num_steps - 1
    tile_rows = _round_up(pl.cdiv(rows, num_steps), sublane)
    tile_rows = min(tile_rows, _round_up(rows, sublane))
    grid = pl.cdiv(rows, tile_rows)
    return tile_rows, grid


def _tanh_2d(x2d: jax.Array, tile_rows: int, grid: int) -> jax.Array:
    rows, cols = x2d.shape
    return pl.pallas_call(
        _tanh_kernel,
        out_shape=jax.ShapeDtypeStruct((rows, cols), x2d.dtype),
        grid_spec=pltpu.PrefetchScalarGridSpec(
            num_scalar_prefetch=0,
            grid=(grid,),
            in_specs=[pl.BlockSpec((tile_rows, cols), lambda i: (i, 0))],
            out_specs=pl.BlockSpec((tile_rows, cols), lambda i: (i, 0)),
        ),
        compiler_params=pltpu.CompilerParams(
            dimension_semantics=("parallel",),
            vmem_limit_bytes=_vmem_limit_bytes(),
        ),
    )(x2d)


def tanh_pallas(x: jax.Array) -> jax.Array:
    """Elementwise tanh matching torch.Tensor.tanh (same shape/dtype)."""
    orig_shape, orig_dtype = x.shape, x.dtype
    n = x.size
    if n == 0:
        return x
    if n < _SMALL_BYPASS_ELEMS:
        # Launch/DMA setup would dwarf the work for small inputs.
        return jnp.tanh(x)

    itemsize = jnp.dtype(orig_dtype).itemsize
    # Sublane packing multiple: f32 -> 8, bf16 -> 16, int8/fp8 -> 32.
    sublane = max(8, 32 // max(1, itemsize))

    cols = _choose_cols(n, sublane)
    if cols is not None:
        # Fast path: free reshape, no pad, no output slice. Pallas masks the
        # partial final row-block (garbage lanes never stored).
        rows = n // cols
        tile_rows, grid = _choose_tiling(rows, cols, itemsize, sublane)
        out2d = _tanh_2d(x.reshape(rows, cols), tile_rows, grid)
        return out2d.reshape(orig_shape)

    # Fallback (n % 128 != 0): pad the flat buffer up to whole rows (tanh(0)=0,
    # padded tail sliced off afterwards).
    cols = _FALLBACK_COLS
    rows = pl.cdiv(n, cols)
    padded_n = rows * cols
    x_flat = jnp.pad(x.reshape(-1), (0, padded_n - n))
    tile_rows, grid = _choose_tiling(rows, cols, itemsize, sublane)
    out2d = _tanh_2d(x_flat.reshape(rows, cols), tile_rows, grid)
    return out2d.reshape(-1)[:n].reshape(orig_shape)


class Tanh:
    """Mirror of the PyTorch module's forward/backward (JAX arrays are immutable,
    so the .clone() is implicit)."""

    def __init__(self):
        self.input = None

    def __repr__(self):
        return "[Tanh]\n"

    def forward(self, x):
        self.input = x
        return tanh_pallas(x)

    def backward(self, gradwrtoutput):
        t = tanh_pallas(self.input)
        return gradwrtoutput * (1.0 - t * t)


if __name__ == "__main__":
    key = jax.random.PRNGKey(0)

    # Module-scale small input (below the bypass threshold: fused XLA tanh path).
    x = jax.random.normal(key, (2, 4, 16, 16), dtype=jnp.float32)
    mod = Tanh()
    y = jax.block_until_ready(mod.forward(x))
    assert y.shape == x.shape and y.dtype == x.dtype
    assert jnp.allclose(y, jnp.tanh(x), atol=1e-6, rtol=1e-6)

    # Larger input exercises the Pallas fast path (no pad/slice, even grid >= 4).
    x2 = jax.random.normal(jax.random.fold_in(key, 1), (8, 4, 64, 128), dtype=jnp.float32)
    y2 = jax.block_until_ready(tanh_pallas(x2))
    assert y2.shape == x2.shape and y2.dtype == x2.dtype
    assert jnp.allclose(y2, jnp.tanh(x2), atol=1e-6, rtol=1e-6)

    # Irregular size (not a multiple of 128) above the bypass: pad fallback path.
    x3 = jax.random.normal(jax.random.fold_in(key, 2), (3, 7, 59, 113), dtype=jnp.float32)
    y3 = jax.block_until_ready(tanh_pallas(x3))
    assert y3.shape == x3.shape and y3.dtype == x3.dtype
    assert jnp.allclose(y3, jnp.tanh(x3), atol=1e-6, rtol=1e-6)

    print("KERNEL_OK")
</pallas_src>

<mosaic_0001>
module attributes {stable_mosaic.version = 11 : i64} {
  func.func @_tanh_kernel(%arg0: i32, %arg1: memref<16x4096xf32, #tpu.memory_space<vmem>>, %arg2: memref<16x4096xf32, #tpu.memory_space<vmem>>) attributes {dimension_semantics = [#tpu.dimension_semantics<parallel>], iteration_bounds = array<i64: 4>, scalar_prefetch = 0 : i64, scratch_operands = 0 : i64, tpu.core_type = #tpu.core_type<tc>, window_params = [{transform_indices = @transform_0, window_bounds = array<i64: 16, 4096>}, {transform_indices = @transform_1, window_bounds = array<i64: 16, 4096>}]} {
    %c0 = arith.constant 0 : index
    %c0_0 = arith.constant 0 : index
    %0 = vector.load %arg1[%c0, %c0_0] : memref<16x4096xf32, #tpu.memory_space<vmem>>, vector<16x4096xf32>
    %1 = math.tanh %0 : vector<16x4096xf32>
    %c0_1 = arith.constant 0 : index
    %c0_2 = arith.constant 0 : index
    %2 = vector.load %arg2[%c0_1, %c0_2] : memref<16x4096xf32, #tpu.memory_space<vmem>>, vector<16x4096xf32>
    tpu.vector_store %arg2[%c0_1, %c0_2], %1 {strides = array<i32>} : memref<16x4096xf32, #tpu.memory_space<vmem>>, vector<16x4096xf32>,
    return
  }
  func.func @transform_0(%arg0: i32) -> (i32, i32) {
    %c0_i32 = arith.constant 0 : i32
    %c0_i32_0 = arith.constant 0 : i32
    return %arg0, %c0_i32 : i32, i32
  }
  func.func @transform_1(%arg0: i32) -> (i32, i32) {
    %c0_i32 = arith.constant 0 : i32
    %c0_i32_0 = arith.constant 0 : i32
    return %arg0, %c0_i32 : i32, i32
  }
}

</mosaic_0001>

<bundles_post_ra>
// kernel: tpu_custom_call.1
= control target key start
LH: loop header
LB: loop body
LE: loop exit
PB: predicated region body
PF: predicated region fallthrough
CT: control target
= control target key end

     0   :  { %6 = vsyncpa [#allocation3], 0  ;;  %s1015_s0 = inlined_call_operand.hbm [shape: f32[64,4096], index: 0, kind: input, shape index: {}]   ;;  %s1016_s1 = inlined_call_operand.hbm [shape: f32[64,4096], index: 1, kind: output, shape index: {}]  }
   0x1   :  { %8 = vsyncpa [#allocation3 + $0x1], 0 }
   0x2   :  { %9 = vsyncpa [#allocation4], 0 }
   0x3   :  { %11 = vsyncpa [#allocation4 + $0x1], 0  ;;  %s726_s6 = smov 0   ;;  %s728_s7 = smov 0  }
   0x4   :  { %s730_s8 = smov 0   ;;  %s732_s9 = smov 0  }
   0x5 LB: > { %s747_s10 = sadd.s32 4294967295, %s708_s9   ;;  %s418_s11 = sadd.s32 4294967294, %s708_s9   ;;  %s708_s9 = sphi %s732_s9, %s1030_s9   ;;  %s704_s8 = sphi %s730_s8, %s1029_s8   ;;  %s700_s7 = sphi %s728_s7, %s1028_s7   ;;  %s696_s6 = sphi %s726_s6, %s1027_s6  }
   0x6   : > { %s751_s12 = sadd.s32 1, %s708_s9   ;;  %s24_s13 = sadd.s32 1, %s704_s8 }
   0x7   : > { %s21_s14 = ssub.s32 %s708_s9, %s751_s12  ;;  %p31_p0 = scmp.ne.s32.totalorder %s704_s8, %s700_s7 }
   0x8   : > { %p22_p1 = scmp.eq.s32.totalorder %s21_s14, 0  ;;  %p32_p2 = scmp.eq.s32.totalorder %s708_s9, 0 }
   0x9   : > { %p37_p3 = scmp.ne.s32.totalorder %s700_s7, %s696_s6  ;;  %p38_p4 = scmp.eq.s32.totalorder %s747_s10, 0 }
   0xa   : > { %s763_s15 = scalar_select %p22_p1, %s704_s8, %s24_s13  }
   0xb   : > { %p765_p5 = por %p32_p2, %p31_p0  ;;  %p769_p6 = por %p38_p4, %p37_p3 }
   0xc   : > { %p61_p7 = scmp.eq.s32.totalorder %s747_s10, 3  ;;  %p67_p8 = scmp.eq.s32.totalorder %s418_s11, 3 }
   0xd   : > { %s1020_s17 = scalar_select %p769_p6, 1, 0 }
   0xe   : > { %p450_p9 = scmp.lt.s32.totalorder %s708_s9, 4  ;;  %p775_p10 = por %p61_p7, %p31_p0 }
   0xf   : > { %p779_p11 = por %p67_p8, %p37_p3  ;;  %s87_s20 = sand.u32 1, %s704_s8  }
  0x10   : > { %s1021_s18 = scalar_select %p775_p10, 1, 0 }
  0x11   : > { %s1022_s19 = scalar_select %p779_p11, 1, 0 }
  0x12   : > { %s435_s21 = sshll.u32 %s708_s9, 13  ;;  %s421_s22 = sshll.u32 %s87_s20, 9 }
  0x13   : > { %s788_s25 = scalar_lea.hbm %s1015_s0, %s435_s21  ;;  %s91_s26 = scalar_lea.vmem [#allocation2], %s421_s22 }
  0x14   : > { %s99_s27 = sshll.u32 %s91_s26, 4  ;;  %p792_p12 = pnand %p450_p9, %p765_p5  ;;  %s796_s27 = int_to_ptr.vmem [resolvable:$true] %s99_s27 }
  0x15   : > { %s798_s29 = scalar_lea.sflag [#allocation3], %s87_s20  ;;  %s616_s30 = scalar_lea.hbm %s788_s25, 8192 }
  0x16   : > { %p617_p13 = scmp.ne.s32.totalorder %s788_s25, %s616_s30  ;;  %p618_p0 = pneg %p792_p12 }
  0x17   : > { %s621_s4 = scalar_lea.hbm %s1015_s0, 32768  ;;  %p622_p3 = scmp.lt.s32.totalorder %s788_s25, %s1015_s0 }
  0x18   : > { %p619_p1 = pnand %p618_p0, %p617_p13  ;;  %p623_p4 = scmp.lt.s32.totalorder %s621_s4, %s616_s30 }
  0x1a   : > { %p620_p2 = pneg %p619_p1  ;;  %p624_p5 = por %p623_p4, %p622_p3 }
  0x1c   : > { %p625_p7 = pnand %p624_p5, %p620_p2 }
  0x1e   : > { %628 = shalt.err (!%p625_p7)
}
  0x1f   : > { %s629_s13 = scalar_lea.vmem %s796_s27, 8192  ;;  %s710_s14 = smov [#allocation2]  }
  0x20   : > { %p630_p8 = scmp.ne.s32.totalorder %s796_s27, %s629_s13  ;;  %s634_s16 = sshll.u32 %s710_s14, 4  ;;  %s635_s16 = int_to_ptr.vmem [resolvable:$false] %s634_s16 }
  0x21   : > { %s636_s20 = scalar_lea.vmem %s635_s16, 16384  ;;  %p637_p1 = scmp.lt.s32.totalorder %s796_s27, %s635_s16 }
  0x22   : > { %p632_p9 = pnand %p630_p8, %p618_p0  ;;  %p638_p11 = scmp.lt.s32.totalorder %s636_s20, %s629_s13 }
  0x24   : > { %p633_p13 = pneg %p632_p9  ;;  %p639_p10 = por %p638_p11, %p637_p1 }
  0x26   : > { %p640_p6 = pnand %p639_p10, %p633_p13 }
  0x28   : > { %643 = shalt.err (!%p640_p6)
}
  0x29   : > { %s711_s21 = smov 4096   ;;  %s712_s22 = smov 256  }
  0x2a   : > { %445 = dma.hbm_to_vmem [thread:$0]  (!%p792_p12), %s788_s25, 8192, %s796_s27, %s798_s29, %s711_s21, %s711_s21, %s712_s22  }
  0x2b   : > { %p425_p0 = scmp.ge.s32.totalorder %s708_s9, 1  ;;  %p107_p2 = scmp.lt.s32.totalorder %s708_s9, 5 }
  0x2d   : > { %p108_p3 = pnand %p425_p0, %p107_p2 }
  0x2e   : > { %s822_s23 = sand.u32 (!%p108_p3), 1, %s700_s7   ;;  %p1024_p6 = scmp.ne.s32.totalorder (!%p108_p3), %s1020_s17, 0 }
  0x2f   : > { %111 = sbr.rel (%p108_p3) target bundleno = 145 (0x91), region = 24  ;;  %s426_s24 = sshll.u32 (!%p108_p3), %s822_s23, 9 }
  0x30   : > { %s114_s26 = scalar_lea.sflag (!%p108_p3), [#allocation3], %s822_s23  ;;  %s828_s30 = scalar_lea.vmem (!%p108_p3), [#allocation2], %s426_s24 }
  0x34   : > { %687 = dma.done.wait (%p1024_p6), %s114_s26, 8192  }
  0x35   : > { %689 = vsyncadd (%p1024_p6), %s114_s26, 4294959104  ;;  %v138_v0 = vld [vmem:[%s828_s30] sm:$0xff]  ;;  %v139_v1 = vld [vmem:[%s828_s30 + $0x8] sm:$0xff]  ;;  %s853_s17 = scalar_lea.vmem [#allocation5], %s426_s24  ;;  %s437_s25 = sshll.u32 %s747_s10, 13 }
  0x36   : > { %v140_v2 = vld [vmem:[%s828_s30 + $0x10] sm:$0xff]  ;;  %488 = vtanh.f32 %v138_v0  ;;  %v141_v3 = vld [vmem:[%s828_s30 + $0x18] sm:$0xff]  ;;  %v142_v4 = vld [vmem:[%s828_s30 + $0x20] sm:$0xff]  ;;  %s345_s27 = sshll.u32 %s853_s17, 4  ;;  %s968_s2 = scalar_lea.hbm %s1016_s1, %s437_s25  ;;  %s970_s27 = int_to_ptr.vmem [resolvable:$true] %s345_s27 }
  0x37   : > { %490 = vtanh.f32 %v139_v1  ;;  %v143_v5 = vld [vmem:[%s828_s30 + $0x28] sm:$0xff]  ;;  %v144_v6 = vld [vmem:[%s828_s30 + $0x30] sm:$0xff]  ;;  %v145_v7 = vld [vmem:[%s828_s30 + $0x38] sm:$0xff]  ;;  %s331_s10 = scalar_lea.sflag [#allocation4], %s822_s23  ;;  %s644_s3 = scalar_lea.vmem %s970_s27, 8192 }
  0x38   : > { %492 = vtanh.f32 %v140_v2  ;;  %v146_v8 = vld [vmem:[%s828_s30 + $0x40] sm:$0xff]  ;;  %v147_v9 = vld [vmem:[%s828_s30 + $0x48] sm:$0xff]  ;;  %v148_v10 = vld [vmem:[%s828_s30 + $0x50] sm:$0xff]  ;;  %p645_p10 = scmp.ne.s32.totalorder %s970_s27, %s644_s3  ;;  %p1025_p11 = scmp.ne.s32.totalorder %s1021_s18, 0 }
  0x39   : > { %494 = vtanh.f32 %v141_v3  ;;  %v149_v11 = vld [vmem:[%s828_s30 + $0x58] sm:$0xff]  ;;  %v150_v12 = vld [vmem:[%s828_s30 + $0x60] sm:$0xff]  ;;  %v151_v13 = vld [vmem:[%s828_s30 + $0x68] sm:$0xff]  ;;  %s713_s4 = smov [#allocation5]  }
  0x3a   : > { %496 = vtanh.f32 %v142_v4  ;;  %v152_v14 = vld [vmem:[%s828_s30 + $0x70] sm:$0xff]  ;;  %v153_v15 = vld [vmem:[%s828_s30 + $0x78] sm:$0xff]  ;;  %v154_v17 = vld [vmem:[%s828_s30 + $0x80] sm:$0xff]  ;;  %p646_p12 = pnand %p645_p10, %p1025_p11  ;;  %s648_s5 = sshll.u32 %s713_s4, 4  ;;  %s649_s5 = int_to_ptr.vmem [resolvable:$false] %s648_s5 }
  0x3b   : > { %498 = vtanh.f32 %v143_v5  ;;  %v155_v19 = vld [vmem:[%s828_s30 + $0x88] sm:$0xff]  ;;  %v156_v21 = vld [vmem:[%s828_s30 + $0x90] sm:$0xff]  ;;  %v157_v23 = vld [vmem:[%s828_s30 + $0x98] sm:$0xff]  ;;  %s650_s11 = scalar_lea.vmem %s649_s5, 16384  ;;  %p651_p5 = scmp.lt.s32.totalorder %s970_s27, %s649_s5 }
  0x3c   : > { %500 = vtanh.f32 %v144_v6  ;;  %v158_v25 = vld [vmem:[%s828_s30 + $0xa0] sm:$0xff]  ;;  %v159_v27 = vld [vmem:[%s828_s30 + $0xa8] sm:$0xff]  ;;  %v160_v29 = vld [vmem:[%s828_s30 + $0xb0] sm:$0xff]  ;;  %p647_p4 = pneg %p646_p12  ;;  %p652_p7 = scmp.lt.s32.totalorder %s650_s11, %s644_s3 }
  0x3d   : > { %502 = vtanh.f32 %v145_v7  ;;  %v161_v31 = vld [vmem:[%s828_s30 + $0xb8] sm:$0xff]  ;;  %v162_v33 = vld [vmem:[%s828_s30 + $0xc0] sm:$0xff]  ;;  %v163_v35 = vld [vmem:[%s828_s30 + $0xc8] sm:$0xff] }
  0x3e   : > { %504 = vtanh.f32 %v146_v8  ;;  %v164_v37 = vld [vmem:[%s828_s30 + $0xd0] sm:$0xff]  ;;  %v165_v39 = vld [vmem:[%s828_s30 + $0xd8] sm:$0xff]  ;;  %v166_v41 = vld [vmem:[%s828_s30 + $0xe0] sm:$0xff]  ;;  %p653_p8 = por %p652_p7, %p651_p5 }
  0x3f   : > { %506 = vtanh.f32 %v147_v9  ;;  %v167_v43 = vld [vmem:[%s828_s30 + $0xe8] sm:$0xff]  ;;  %v168_v45 = vld [vmem:[%s828_s30 + $0xf0] sm:$0xff]  ;;  %v169_v47 = vld [vmem:[%s828_s30 + $0xf8] sm:$0xff] }
  0x40   : > { %508 = vtanh.f32 %v148_v10  ;;  %v170_v49 = vld [vmem:[%s828_s30 + $0x100] sm:$0xff]  ;;  %v171_v51 = vld [vmem:[%s828_s30 + $0x108] sm:$0xff]  ;;  %v172_v53 = vld [vmem:[%s828_s30 + $0x110] sm:$0xff]  ;;  %p654_p9 = pnand %p653_p8, %p647_p4 }
  0x41   : > { %510 = vtanh.f32 %v149_v11  ;;  %v173_v55 = vld [vmem:[%s828_s30 + $0x118] sm:$0xff]  ;;  %v174_v57 = vld [vmem:[%s828_s30 + $0x120] sm:$0xff]  ;;  %v175_v59 = vld [vmem:[%s828_s30 + $0x128] sm:$0xff] }
  0x42   : > { %512 = vtanh.f32 %v150_v12  ;;  %v176_v61 = vld [vmem:[%s828_s30 + $0x130] sm:$0xff]  ;;  %v177_v63 = vld [vmem:[%s828_s30 + $0x138] sm:$0xff]  ;;  %v178_v1 = vld [vmem:[%s828_s30 + $0x140] sm:$0xff] }
  0x43   : > { %v489_v16 = vpop.eup %488  ;;  %514 = vtanh.f32 %v151_v13  ;;  %v179_v3 = vld [vmem:[%s828_s30 + $0x148] sm:$0xff]  ;;  %v180_v5 = vld [vmem:[%s828_s30 + $0x150] sm:$0xff]  ;;  %v181_v7 = vld [vmem:[%s828_s30 + $0x158] sm:$0xff] }
  0x44   : > { %v491_v18 = vpop.eup %490  ;;  %266 = vst [vmem:[%s853_s17] sm:$0xff] %v489_v16  ;;  %516 = vtanh.f32 %v152_v14  ;;  %v182_v9 = vld [vmem:[%s828_s30 + $0x160] sm:$0xff]  ;;  %v183_v11 = vld [vmem:[%s828_s30 + $0x168] sm:$0xff]  ;;  %v184_v13 = vld [vmem:[%s828_s30 + $0x170] sm:$0xff] }
  0x45   : > { %v493_v20 = vpop.eup %492  ;;  %267 = vst [vmem:[%s853_s17 + $0x8] sm:$0xff] %v491_v18  ;;  %518 = vtanh.f32 %v153_v15  ;;  %v185_v15 = vld [vmem:[%s828_s30 + $0x178] sm:$0xff] }
  0x46   : > { %v495_v22 = vpop.eup %494  ;;  %268 = vst [vmem:[%s853_s17 + $0x10] sm:$0xff] %v493_v20  ;;  %520 = vtanh.f32 %v154_v17  ;;  %v186_v17 = vld [vmem:[%s828_s30 + $0x180] sm:$0xff] }
  0x47   : > { %v497_v24 = vpop.eup %496  ;;  %269 = vst [vmem:[%s853_s17 + $0x18] sm:$0xff] %v495_v22  ;;  %522 = vtanh.f32 %v155_v19  ;;  %v187_v19 = vld [vmem:[%s828_s30 + $0x188] sm:$0xff] }
  0x48   : > { %v499_v26 = vpop.eup %498  ;;  %270 = vst [vmem:[%s853_s17 + $0x20] sm:$0xff] %v497_v24  ;;  %524 = vtanh.f32 %v156_v21  ;;  %v188_v21 = vld [vmem:[%s828_s30 + $0x190] sm:$0xff] }
  0x49   : > { %v501_v28 = vpop.eup %500  ;;  %271 = vst [vmem:[%s853_s17 + $0x28] sm:$0xff] %v499_v26  ;;  %526 = vtanh.f32 %v157_v23  ;;  %v189_v23 = vld [vmem:[%s828_s30 + $0x198] sm:$0xff] }
  0x4a   : > { %v503_v30 = vpop.eup %502  ;;  %272 = vst [vmem:[%s853_s17 + $0x30] sm:$0xff] %v501_v28  ;;  %528 = vtanh.f32 %v158_v25  ;;  %v190_v25 = vld [vmem:[%s828_s30 + $0x1a0] sm:$0xff] }
  0x4b   : > { %v505_v32 = vpop.eup %504  ;;  %273 = vst [vmem:[%s853_s17 + $0x38] sm:$0xff] %v503_v30  ;;  %530 = vtanh.f32 %v159_v27  ;;  %v191_v27 = vld [vmem:[%s828_s30 + $0x1a8] sm:$0xff] }
  0x4c   : > { %v507_v34 = vpop.eup %506  ;;  %274 = vst [vmem:[%s853_s17 + $0x40] sm:$0xff] %v505_v32  ;;  %532 = vtanh.f32 %v160_v29  ;;  %v192_v29 = vld [vmem:[%s828_s30 + $0x1b0] sm:$0xff] }
  0x4d   : > { %v509_v36 = vpop.eup %508  ;;  %275 = vst [vmem:[%s853_s17 + $0x48] sm:$0xff] %v507_v34  ;;  %534 = vtanh.f32 %v161_v31  ;;  %v193_v31 = vld [vmem:[%s828_s30 + $0x1b8] sm:$0xff] }
  0x4e   : > { %v511_v38 = vpop.eup %510  ;;  %276 = vst [vmem:[%s853_s17 + $0x50] sm:$0xff] %v509_v36  ;;  %536 = vtanh.f32 %v162_v33  ;;  %v194_v33 = vld [vmem:[%s828_s30 + $0x1c0] sm:$0xff] }
  0x4f   : > { %v513_v40 = vpop.eup %512  ;;  %277 = vst [vmem:[%s853_s17 + $0x58] sm:$0xff] %v511_v38  ;;  %538 = vtanh.f32 %v163_v35  ;;  %v195_v35 = vld [vmem:[%s828_s30 + $0x1c8] sm:$0xff] }
  0x50   : > { %v515_v42 = vpop.eup %514  ;;  %278 = vst [vmem:[%s853_s17 + $0x60] sm:$0xff] %v513_v40  ;;  %540 = vtanh.f32 %v164_v37  ;;  %v196_v37 = vld [vmem:[%s828_s30 + $0x1d0] sm:$0xff] }
  0x51   : > { %v517_v44 = vpop.eup %516  ;;  %279 = vst [vmem:[%s853_s17 + $0x68] sm:$0xff] %v515_v42  ;;  %542 = vtanh.f32 %v165_v39  ;;  %v197_v39 = vld [vmem:[%s828_s30 + $0x1d8] sm:$0xff] }
  0x52   : > { %v519_v46 = vpop.eup %518  ;;  %280 = vst [vmem:[%s853_s17 + $0x70] sm:$0xff] %v517_v44  ;;  %544 = vtanh.f32 %v166_v41  ;;  %v198_v41 = vld [vmem:[%s828_s30 + $0x1e0] sm:$0xff] }
  0x53   : > { %v521_v48 = vpop.eup %520  ;;  %281 = vst [vmem:[%s853_s17 + $0x78] sm:$0xff] %v519_v46  ;;  %546 = vtanh.f32 %v167_v43  ;;  %v199_v43 = vld [vmem:[%s828_s30 + $0x1e8] sm:$0xff] }
  0x54   : > { %v523_v50 = vpop.eup %522  ;;  %282 = vst [vmem:[%s853_s17 + $0x80] sm:$0xff] %v521_v48  ;;  %548 = vtanh.f32 %v168_v45  ;;  %v200_v45 = vld [vmem:[%s828_s30 + $0x1f0] sm:$0xff] }
  0x55   : > { %v525_v52 = vpop.eup %524  ;;  %283 = vst [vmem:[%s853_s17 + $0x88] sm:$0xff] %v523_v50  ;;  %550 = vtanh.f32 %v169_v47  ;;  %v201_v47 = vld [vmem:[%s828_s30 + $0x1f8] sm:$0xff] }
  0x56   : > { %v527_v54 = vpop.eup %526  ;;  %284 = vst [vmem:[%s853_s17 + $0x90] sm:$0xff] %v525_v52  ;;  %552 = vtanh.f32 %v170_v49 }
  0x57   : > { %v529_v56 = vpop.eup %528  ;;  %285 = vst [vmem:[%s853_s17 + $0x98] sm:$0xff] %v527_v54  ;;  %554 = vtanh.f32 %v171_v51 }
  0x58   : > { %v531_v58 = vpop.eup %530  ;;  %286 = vst [vmem:[%s853_s17 + $0xa0] sm:$0xff] %v529_v56  ;;  %556 = vtanh.f32 %v172_v53 }
  0x59   : > { %v533_v60 = vpop.eup %532  ;;  %287 = vst [vmem:[%s853_s17 + $0xa8] sm:$0xff] %v531_v58  ;;  %558 = vtanh.f32 %v173_v55 }
  0x5a   : > { %v535_v62 = vpop.eup %534  ;;  %288 = vst [vmem:[%s853_s17 + $0xb0] sm:$0xff] %v533_v60  ;;  %560 = vtanh.f32 %v174_v57 }
  0x5b   : > { %v537_v0 = vpop.eup %536  ;;  %289 = vst [vmem:[%s853_s17 + $0xb8] sm:$0xff] %v535_v62  ;;  %562 = vtanh.f32 %v175_v59 }
  0x5c   : > { %v539_v2 = vpop.eup %538  ;;  %290 = vst [vmem:[%s853_s17 + $0xc0] sm:$0xff] %v537_v0  ;;  %564 = vtanh.f32 %v176_v61 }
  0x5d   : > { %v541_v4 = vpop.eup %540  ;;  %291 = vst [vmem:[%s853_s17 + $0xc8] sm:$0xff] %v539_v2  ;;  %566 = vtanh.f32 %v177_v63 }
  0x5e   : > { %v543_v6 = vpop.eup %542  ;;  %292 = vst [vmem:[%s853_s17 + $0xd0] sm:$0xff] %v541_v4  ;;  %568 = vtanh.f32 %v178_v1 }
  0x5f   : > { %v545_v8 = vpop.eup %544  ;;  %293 = vst [vmem:[%s853_s17 + $0xd8] sm:$0xff] %v543_v6  ;;  %570 = vtanh.f32 %v179_v3 }
  0x60   : > { %v547_v10 = vpop.eup %546  ;;  %294 = vst [vmem:[%s853_s17 + $0xe0] sm:$0xff] %v545_v8  ;;  %572 = vtanh.f32 %v180_v5 }
  0x61   : > { %v549_v12 = vpop.eup %548  ;;  %295 = vst [vmem:[%s853_s17 + $0xe8] sm:$0xff] %v547_v10  ;;  %574 = vtanh.f32 %v181_v7 }
  0x62   : > { %v551_v14 = vpop.eup %550  ;;  %296 = vst [vmem:[%s853_s17 + $0xf0] sm:$0xff] %v549_v12  ;;  %576 = vtanh.f32 %v182_v9 }
  0x63   : > { %v553_v16 = vpop.eup %552  ;;  %297 = vst [vmem:[%s853_s17 + $0xf8] sm:$0xff] %v551_v14  ;;  %578 = vtanh.f32 %v183_v11 }
  0x64   : > { %v555_v18 = vpop.eup %554  ;;  %298 = vst [vmem:[%s853_s17 + $0x100] sm:$0xff] %v553_v16  ;;  %580 = vtanh.f32 %v184_v13 }
  0x65   : > { %v557_v20 = vpop.eup %556  ;;  %299 = vst [vmem:[%s853_s17 + $0x108] sm:$0xff] %v555_v18  ;;  %582 = vtanh.f32 %v185_v15 }
  0x66   : > { %v559_v22 = vpop.eup %558  ;;  %300 = vst [vmem:[%s853_s17 + $0x110] sm:$0xff] %v557_v20  ;;  %584 = vtanh.f32 %v186_v17 }
  0x67   : > { %v561_v24 = vpop.eup %560  ;;  %301 = vst [vmem:[%s853_s17 + $0x118] sm:$0xff] %v559_v22  ;;  %586 = vtanh.f32 %v187_v19 }
  0x68   : > { %v563_v26 = vpop.eup %562  ;;  %302 = vst [vmem:[%s853_s17 + $0x120] sm:$0xff] %v561_v24  ;;  %588 = vtanh.f32 %v188_v21 }
  0x69   : > { %v565_v28 = vpop.eup %564  ;;  %303 = vst [vmem:[%s853_s17 + $0x128] sm:$0xff] %v563_v26  ;;  %590 = vtanh.f32 %v189_v23 }
  0x6a   : > { %v567_v30 = vpop.eup %566  ;;  %304 = vst [vmem:[%s853_s17 + $0x130] sm:$0xff] %v565_v28  ;;  %592 = vtanh.f32 %v190_v25 }
  0x6b   : > { %v569_v32 = vpop.eup %568  ;;  %305 = vst [vmem:[%s853_s17 + $0x138] sm:$0xff] %v567_v30  ;;  %594 = vtanh.f32 %v191_v27 }
  0x6c   : > { %v571_v34 = vpop.eup %570  ;;  %306 = vst [vmem:[%s853_s17 + $0x140] sm:$0xff] %v569_v32  ;;  %596 = vtanh.f32 %v192_v29 }
  0x6d   : > { %v573_v36 = vpop.eup %572  ;;  %307 = vst [vmem:[%s853_s17 + $0x148] sm:$0xff] %v571_v34  ;;  %598 = vtanh.f32 %v193_v31 }
  0x6e   : > { %v575_v38 = vpop.eup %574  ;;  %308 = vst [vmem:[%s853_s17 + $0x150] sm:$0xff] %v573_v36  ;;  %600 = vtanh.f32 %v194_v33 }
  0x6f   : > { %v577_v40 = vpop.eup %576  ;;  %309 = vst [vmem:[%s853_s17 + $0x158] sm:$0xff] %v575_v38  ;;  %602 = vtanh.f32 %v195_v35 }
  0x70   : > { %v579_v42 = vpop.eup %578  ;;  %310 = vst [vmem:[%s853_s17 + $0x160] sm:$0xff] %v577_v40  ;;  %604 = vtanh.f32 %v196_v37 }
  0x71   : > { %v581_v44 = vpop.eup %580  ;;  %311 = vst [vmem:[%s853_s17 + $0x168] sm:$0xff] %v579_v42  ;;  %606 = vtanh.f32 %v197_v39 }
  0x72   : > { %v583_v46 = vpop.eup %582  ;;  %312 = vst [vmem:[%s853_s17 + $0x170] sm:$0xff] %v581_v44  ;;  %608 = vtanh.f32 %v198_v41 }
  0x73   : > { %v585_v48 = vpop.eup %584  ;;  %313 = vst [vmem:[%s853_s17 + $0x178] sm:$0xff] %v583_v46  ;;  %610 = vtanh.f32 %v199_v43 }
  0x74   : > { %v587_v49 = vpop.eup %586  ;;  %314 = vst [vmem:[%s853_s17 + $0x180] sm:$0xff] %v585_v48  ;;  %612 = vtanh.f32 %v200_v45 }
  0x75   : > { %v589_v50 = vpop.eup %588  ;;  %315 = vst [vmem:[%s853_s17 + $0x188] sm:$0xff] %v587_v49  ;;  %614 = vtanh.f32 %v201_v47 }
  0x76   : > { %v591_v51 = vpop.eup %590  ;;  %316 = vst [vmem:[%s853_s17 + $0x190] sm:$0xff] %v589_v50 }
  0x77   : > { %v593_v52 = vpop.eup %592  ;;  %317 = vst [vmem:[%s853_s17 + $0x198] sm:$0xff] %v591_v51 }
  0x78   : > { %v595_v53 = vpop.eup %594  ;;  %318 = vst [vmem:[%s853_s17 + $0x1a0] sm:$0xff] %v593_v52 }
  0x79   : > { %v597_v54 = vpop.eup %596  ;;  %319 = vst [vmem:[%s853_s17 + $0x1a8] sm:$0xff] %v595_v53 }
  0x7a   : > { %v599_v55 = vpop.eup %598  ;;  %320 = vst [vmem:[%s853_s17 + $0x1b0] sm:$0xff] %v597_v54 }
  0x7b   : > { %v601_v56 = vpop.eup %600  ;;  %321 = vst [vmem:[%s853_s17 + $0x1b8] sm:$0xff] %v599_v55 }
  0x7c   : > { %v603_v57 = vpop.eup %602  ;;  %322 = vst [vmem:[%s853_s17 + $0x1c0] sm:$0xff] %v601_v56 }
  0x7d   : > { %v605_v58 = vpop.eup %604  ;;  %323 = vst [vmem:[%s853_s17 + $0x1c8] sm:$0xff] %v603_v57 }
  0x7e   : > { %v607_v59 = vpop.eup %606  ;;  %324 = vst [vmem:[%s853_s17 + $0x1d0] sm:$0xff] %v605_v58 }
  0x7f   : > { %v609_v60 = vpop.eup %608  ;;  %325 = vst [vmem:[%s853_s17 + $0x1d8] sm:$0xff] %v607_v59 }
  0x80   : > { %v611_v61 = vpop.eup %610  ;;  %326 = vst [vmem:[%s853_s17 + $0x1e0] sm:$0xff] %v609_v60 }
  0x81   : > { %v613_v62 = vpop.eup %612  ;;  %327 = vst [vmem:[%s853_s17 + $0x1e8] sm:$0xff] %v611_v61 }
  0x82   : > { %v615_v63 = vpop.eup %614  ;;  %328 = vst [vmem:[%s853_s17 + $0x1f0] sm:$0xff] %v613_v62 }
  0x83   : > { %329 = vst [vmem:[%s853_s17 + $0x1f8] sm:$0xff] %v615_v63 }
  0x84   : > { %657 = shalt.err (!%p654_p9)
}
  0x85   : > { %s658_s13 = scalar_lea.hbm %s968_s2, 8192  ;;  %s662_s20 = scalar_lea.hbm %s1016_s1, 32768 }
  0x86   : > { %p659_p13 = scmp.ne.s32.totalorder %s968_s2, %s658_s13  ;;  %p663_p2 = scmp.lt.s32.totalorder %s968_s2, %s1016_s1 }
  0x87   : > { %p664_p3 = scmp.lt.s32.totalorder %s662_s20, %s658_s13 }
  0x88   : > { %p660_p1 = pnand %p659_p13, %p1025_p11 }
  0x89   : > { %p665_p6 = por %p664_p3, %p663_p2 }
  0x8a   : > { %p661_p0 = pneg %p660_p1 }
  0x8c   : > { %p666_p10 = pnand %p665_p6, %p661_p0 }
  0x8e   : > { %669 = shalt.err (!%p666_p10)
}
  0x8f   : > { %s714_s24 = smov 4096   ;;  %s715_s26 = smov 256  }
  0x90   : > { %440 = dma.vmem_to_hbm [thread:$0]  (%p1025_p11), %s970_s27, 8192, %s968_s2, %s331_s10, %s714_s24, %s714_s24, %s715_s26  }
  0x91 PF: > { %p451_p12 = scmp.ge.s32.totalorder %s708_s9, 2  ;;  %s360_s30 = sand.u32 1, %s696_s6  }
  0x92   : > { %p1026_p4 = scmp.ne.s32.totalorder %s1022_s19, 0  ;;  %s361_s17 = scalar_lea.sflag [#allocation4], %s360_s30 }
  0x94   : > { %p447_p5 = pnand %p451_p12, %p1026_p4 }
  0x96   : > { %p448_p7 = pneg %p447_p5 }
  0x98   : > { %691 = dma.done.wait (%p448_p7), %s361_s17, 8192  }
  0x99   : > { %693 = vsyncadd (%p448_p7), %s361_s17, 4294959104  ;;  %p14_p8 = scmp.ge.s32.totalorder %s751_s12, 6   ;;  %s1027_s6 = smov %s700_s7 }
  0x9a   : > { %s1028_s7 = smov %s704_s8  ;;  %s1029_s8 = smov %s763_s15 }
  0x9b   : > { %s1030_s9 = smov %s751_s12  ;;  %16 = sbr.rel (!%p14_p8) target bundleno = 5 (0x5), region = 69 }
  0xa0   :  { %366 = vsyncpa [#allocation3], 1 }
  0xa1   :  { %368 = vsyncpa [#allocation3 + $0x1], 1 }
  0xa2   :  { %369 = vsyncpa [#allocation4], 1 }
  0xa3   :  { %371 = vsyncpa [#allocation4 + $0x1], 1 }

</bundles_post_ra>
